<compile_context>
chip_gen: v6e
topology: v6e:2x2x1
jax: 0.10.0
libtpu: 0.0.40
codegen_flags: <defaults>
</compile_context>

<pallas_src>
from functools import partial

import numpy as np
import jax
import jax.numpy as jnp
from jax import lax
from jax.experimental import pallas as pl
from jax.experimental.pallas import tpu as pltpu


# ---------------- fused Pallas kernel (hot path) ----------------

def _primary_caps_kernel(patches_ref, w_ref, out_ref, *, dim_caps):
    # patches_ref: (Bt, F+1, P)   w_ref: (C_out, F+1)   out_ref: (Bt, C_out, P)
    Bt, C_out, P = out_ref.shape
    w = w_ref[...]                                        # resident across the whole grid

    # Capsules are `dim_caps` consecutive, dim_caps-aligned lanes of the (C_out, P) conv
    # tile (exactly PyTorch's contiguous .view(B, -1, dim_caps), since P % dim_caps == 0).
    # Per-capsule squared norms are built in place with a log2(dim_caps) XOR butterfly of
    # lane rotations (XLU slot, otherwise idle) so every op stays on full (C_out, P) tiles.
    lane = lax.broadcasted_iota(jnp.int32, (C_out, P), 1)
    shifts = []
    sh = 1
    while sh < dim_caps:
        shifts.append(sh)
        sh *= 2
    masks = [(lane & s) == 0 for s in shifts]             # hoisted: loop-invariant in b

    for b in range(Bt):                                   # static unroll over the batch tile
        # conv as im2col matmul on the MXU; bias is folded in via the ones row (f32 acc).
        s = jnp.dot(w, patches_ref[b], preferred_element_type=jnp.float32)   # (C_out, P)

        sqn = s * s
        for sh, m in zip(shifts, masks):
            fwd = pltpu.roll(sqn, P - sh, axis=1)          # value from lane j + sh
            bwd = pltpu.roll(sqn, sh, axis=1)              # value from lane j - sh
            sqn = sqn + jnp.where(m, fwd, bwd)

        # squash: ||s||^2/(1+||s||^2) * s/(||s|| + 1e-8), single divide, all f32.
        out = s * (sqn / ((1.0 + sqn) * (jnp.sqrt(sqn) + 1e-8)))
        out_ref[b] = out.astype(out_ref.dtype)


# ---------------- wrapper (glue in plain JAX, meant to be jitted) ----------------

def primary_capsules_forward(x, weight, bias, dim_caps,
                             kernel_size=5, stride=2, padding=0):
    B, C_in, H, W = x.shape
    C_out = weight.shape[0]
    K = kernel_size

    if padding:
        x = jnp.pad(x, ((0, 0), (0, 0), (padding, padding), (padding, padding)))
        H += 2 * padding
        W += 2 * padding

    Ho = (H - K) // stride + 1
    Wo = (W - K) // stride + 1
    P = Ho * Wo
    F = C_in * K * K

    # In-kernel squash grouping requires capsules not to straddle conv-channel rows and the
    # roll butterfly requires a power-of-two dim_caps (true for standard CapsNets).
    # TODO(synk): general dim_caps / P would need a gather- or matmul-based group sum.
    assert P % dim_caps == 0, "capsule groups must not straddle conv channels"
    assert dim_caps & (dim_caps - 1) == 0, "dim_caps must be a power of two"

    # im2col in XLA (fused under jit): feature order (ci, ky, kx) matches
    # weight.reshape(C_out, -1); spatial flatten is row-major -> NCHW conv output order.
    # TODO(synk): for large inputs, build the patch matrix inside the kernel from a
    # (C_in, H, W) VMEM block instead of materializing the K^2/stride^2 expansion in HBM.
    cols = []
    for ky in range(K):
        for kx in range(K):
            cols.append(x[:, :,
                          ky: ky + stride * (Ho - 1) + 1: stride,
                          kx: kx + stride * (Wo - 1) + 1: stride])   # (B, C_in, Ho, Wo)
    patches = jnp.stack(cols, axis=2).reshape(B, F, P)               # (B, F, P)

    # Fold the bias into the matmul: ones row on the patches, bias column on W.
    patches = jnp.concatenate([patches, jnp.ones((B, 1, P), patches.dtype)], axis=1)
    w_ext = jnp.concatenate([weight.reshape(C_out, F), bias.reshape(C_out, 1)], axis=1)
    F1 = F + 1

    # Batch tile: as many batch rows as comfortably fit a few MiB of VMEM (the pipeline
    # double-buffers the patch block), forced to divide B so the grid is exact.
    per_batch_bytes = (F1 * P + 2 * C_out * P) * 4
    Bt = max(1, min(B, (4 << 20) // per_batch_bytes))
    while B % Bt:
        Bt -= 1
    nb = B // Bt

    out = pl.pallas_call(
        partial(_primary_caps_kernel, dim_caps=dim_caps),
        out_shape=jax.ShapeDtypeStruct((B, C_out, P), x.dtype),
        grid=(nb,),
        in_specs=[pl.BlockSpec((Bt, F1, P), lambda i: (i, 0, 0)),
                  pl.BlockSpec((C_out, F1), lambda i: (0, 0))],      # constant -> resident
        out_specs=pl.BlockSpec((Bt, C_out, P), lambda i: (i, 0, 0)),
        compiler_params=pltpu.CompilerParams(
            dimension_semantics=("parallel",)),
    )(patches, w_ext)

    # Purely-metadata reshape: contiguous NCHW flatten regrouped into capsules, identical
    # to PyTorch's out.view(B, caps_channel, Ho, Wo, dim_caps).view(B, -1, dim_caps).
    return out.reshape(B, (C_out * P) // dim_caps, dim_caps)


# ---------------- pure-JAX reference (verification only) ----------------

def _reference(x, weight, bias, dim_caps, stride, padding):
    conv = lax.conv_general_dilated(
        x, weight, window_strides=(stride, stride),
        padding=[(padding, padding), (padding, padding)],
        dimension_numbers=("NCHW", "OIHW", "NCHW"))
    conv = conv + bias[None, :, None, None]
    B = conv.shape[0]
    s = conv.reshape(B, -1, dim_caps)
    sqn = jnp.sum(s * s, axis=-1, keepdims=True)
    return sqn / (1.0 + sqn) * s / (jnp.sqrt(sqn) + 1e-8)


if __name__ == "__main__":
    key = jax.random.PRNGKey(0)
    kx, kw, kb = jax.random.split(key, 3)

    # PrimaryCapsules(in_channels=4, out_channels=8, dim_caps=4, kernel_size=5, stride=2)
    B, C_in, H, W = 2, 4, 16, 16
    C_out, dim_caps = 8, 4
    K, stride, padding = 5, 2, 0

    x = jax.random.normal(kx, (B, C_in, H, W), dtype=jnp.float32)

    # Deterministic parameter init (PyTorch Conv2d-style uniform bounds).
    fan_in = C_in * K * K
    bound = 1.0 / np.sqrt(fan_in)
    weight = jax.random.uniform(kw, (C_out, C_in, K, K), jnp.float32, -bound, bound)
    bias = jax.random.uniform(kb, (C_out,), jnp.float32, -bound, bound)

    fwd = jax.jit(partial(primary_capsules_forward, dim_caps=dim_caps,
                          kernel_size=K, stride=stride, padding=padding))
    out = jax.block_until_ready(fwd(x, weight, bias))

    ref = _reference(x, weight, bias, dim_caps, stride, padding)
    np.testing.assert_allclose(np.asarray(out), np.asarray(ref), rtol=2e-4, atol=2e-5)

    print("KERNEL_OK")
</pallas_src>

<mosaic_0001>
module attributes {stable_mosaic.version = 11 : i64} {
  func.func @_primary_caps_kernel(%arg0: i32, %arg1: memref<2x101x36xf32, #tpu.memory_space<vmem>>, %arg2: memref<8x101xf32, #tpu.memory_space<vmem>>, %arg3: memref<2x8x36xf32, #tpu.memory_space<vmem>>) attributes {dimension_semantics = [#tpu.dimension_semantics<parallel>], iteration_bounds = array<i64: 1>, scalar_prefetch = 0 : i64, scratch_operands = 0 : i64, tpu.core_type = #tpu.core_type<tc>, window_params = [{transform_indices = @transform_0, window_bounds = array<i64: 2, 101, 36>}, {pipeline_mode = #tpu.pipeline_mode<synchronous>, transform_indices = @transform_1, window_bounds = array<i64: 8, 101>}, {transform_indices = @transform_2, window_bounds = array<i64: 2, 8, 36>}]} {
    %c0 = arith.constant 0 : index
    %c0_0 = arith.constant 0 : index
    %0 = vector.load %arg2[%c0, %c0_0] : memref<8x101xf32, #tpu.memory_space<vmem>>, vector<8x101xf32>
    %1 = tpu.iota {dimensions = array<i32: 1>} : vector<8x36xi32>
    %c1_i32 = arith.constant 1 : i32
    %2 = vector.broadcast %c1_i32 : i32 to vector<8x36xi32>
    %3 = arith.andi %1, %2 : vector<8x36xi32>
    %c0_i32 = arith.constant 0 : i32
    %4 = vector.broadcast %c0_i32 : i32 to vector<8x36xi32>
    %5 = arith.cmpi eq, %3, %4 : vector<8x36xi32>
    %c2_i32 = arith.constant 2 : i32
    %6 = vector.broadcast %c2_i32 : i32 to vector<8x36xi32>
    %7 = arith.andi %1, %6 : vector<8x36xi32>
    %c0_i32_1 = arith.constant 0 : i32
    %8 = vector.broadcast %c0_i32_1 : i32 to vector<8x36xi32>
    %9 = arith.cmpi eq, %7, %8 : vector<8x36xi32>
    %c0_2 = arith.constant 0 : index
    %c0_3 = arith.constant 0 : index
    %c0_4 = arith.constant 0 : index
    %10 = vector.load %arg1[%c0_2, %c0_3, %c0_4] : memref<2x101x36xf32, #tpu.memory_space<vmem>>, vector<1x101x36xf32>
    %11 = vector.shape_cast %10 : vector<1x101x36xf32> to vector<101x36xf32>
    %cst = arith.constant dense<0.000000e+00> : vector<8x36xf32>
    %12 = tpu.matmul %0, %11, %cst {dimension_numbers = #tpu.dot_dimension_numbers<[1], [0], [0], [1], [0, 0, 1, 1], [], []>} : vector<8x101xf32>, vector<101x36xf32>, vector<8x36xf32> -> vector<8x36xf32>
    %13 = arith.mulf %12, %12 : vector<8x36xf32>
    %c35_i32 = arith.constant 35 : i32
    %14 = tpu.dynamic_rotate %13 by %c35_i32 dim 1 : vector<8x36xf32>, i32 -> vector<8x36xf32>
    %c1_i32_5 = arith.constant 1 : i32
    %15 = tpu.dynamic_rotate %13 by %c1_i32_5 dim 1 : vector<8x36xf32>, i32 -> vector<8x36xf32>
    %16 = arith.select %5, %14, %15 : vector<8x36xi1>, vector<8x36xf32>
    %17 = arith.addf %13, %16 : vector<8x36xf32>
    %c34_i32 = arith.constant 34 : i32
    %18 = tpu.dynamic_rotate %17 by %c34_i32 dim 1 : vector<8x36xf32>, i32 -> vector<8x36xf32>
    %c2_i32_6 = arith.constant 2 : i32
    %19 = tpu.dynamic_rotate %17 by %c2_i32_6 dim 1 : vector<8x36xf32>, i32 -> vector<8x36xf32>
    %20 = arith.select %9, %18, %19 : vector<8x36xi1>, vector<8x36xf32>
    %21 = arith.addf %17, %20 : vector<8x36xf32>
    %cst_7 = arith.constant 1.000000e+00 : f32
    %22 = vector.broadcast %cst_7 : f32 to vector<8x36xf32>
    %23 = arith.addf %22, %21 : vector<8x36xf32>
    %24 = math.sqrt %21 : vector<8x36xf32>
    %cst_8 = arith.constant 9.99999993E-9 : f32
    %25 = vector.broadcast %cst_8 : f32 to vector<8x36xf32>
    %26 = arith.addf %24, %25 : vector<8x36xf32>
    %27 = arith.mulf %23, %26 : vector<8x36xf32>
    %28 = arith.divf %21, %27 : vector<8x36xf32>
    %29 = arith.mulf %12, %28 : vector<8x36xf32>
    %c0_9 = arith.constant 0 : index
    %c0_10 = arith.constant 0 : index
    %c0_11 = arith.constant 0 : index
    %30 = vector.load %arg3[%c0_9, %c0_10, %c0_11] : memref<2x8x36xf32, #tpu.memory_space<vmem>>, vector<1x8x36xf32>
    %31 = vector.shape_cast %30 : vector<1x8x36xf32> to vector<8x36xf32>
    %32 = vector.shape_cast %29 : vector<8x36xf32> to vector<1x8x36xf32>
    tpu.vector_store %arg3[%c0_9, %c0_10, %c0_11], %32 {strides = array<i32>} : memref<2x8x36xf32, #tpu.memory_space<vmem>>, vector<1x8x36xf32>,
    %c1 = arith.constant 1 : index
    %c0_12 = arith.constant 0 : index
    %c0_13 = arith.constant 0 : index
    %33 = vector.load %arg1[%c1, %c0_12, %c0_13] : memref<2x101x36xf32, #tpu.memory_space<vmem>>, vector<1x101x36xf32>
    %34 = vector.shape_cast %33 : vector<1x101x36xf32> to vector<101x36xf32>
    %cst_14 = arith.constant dense<0.000000e+00> : vector<8x36xf32>
    %35 = tpu.matmul %0, %34, %cst_14 {dimension_numbers = #tpu.dot_dimension_numbers<[1], [0], [0], [1], [0, 0, 1, 1], [], []>} : vector<8x101xf32>, vector<101x36xf32>, vector<8x36xf32> -> vector<8x36xf32>
    %36 = arith.mulf %35, %35 : vector<8x36xf32>
    %c35_i32_15 = arith.constant 35 : i32
    %37 = tpu.dynamic_rotate %36 by %c35_i32_15 dim 1 : vector<8x36xf32>, i32 -> vector<8x36xf32>
    %c1_i32_16 = arith.constant 1 : i32
    %38 = tpu.dynamic_rotate %36 by %c1_i32_16 dim 1 : vector<8x36xf32>, i32 -> vector<8x36xf32>
    %39 = arith.select %5, %37, %38 : vector<8x36xi1>, vector<8x36xf32>
    %40 = arith.addf %36, %39 : vector<8x36xf32>
    %c34_i32_17 = arith.constant 34 : i32
    %41 = tpu.dynamic_rotate %40 by %c34_i32_17 dim 1 : vector<8x36xf32>, i32 -> vector<8x36xf32>
    %c2_i32_18 = arith.constant 2 : i32
    %42 = tpu.dynamic_rotate %40 by %c2_i32_18 dim 1 : vector<8x36xf32>, i32 -> vector<8x36xf32>
    %43 = arith.select %9, %41, %42 : vector<8x36xi1>, vector<8x36xf32>
    %44 = arith.addf %40, %43 : vector<8x36xf32>
    %cst_19 = arith.constant 1.000000e+00 : f32
    %45 = vector.broadcast %cst_19 : f32 to vector<8x36xf32>
    %46 = arith.addf %45, %44 : vector<8x36xf32>
    %47 = math.sqrt %44 : vector<8x36xf32>
    %cst_20 = arith.constant 9.99999993E-9 : f32
    %48 = vector.broadcast %cst_20 : f32 to vector<8x36xf32>
    %49 = arith.addf %47, %48 : vector<8x36xf32>
    %50 = arith.mulf %46, %49 : vector<8x36xf32>
    %51 = arith.divf %44, %50 : vector<8x36xf32>
    %52 = arith.mulf %35, %51 : vector<8x36xf32>
    %c1_21 = arith.constant 1 : index
    %c0_22 = arith.constant 0 : index
    %c0_23 = arith.constant 0 : index
    %53 = vector.load %arg3[%c1_21, %c0_22, %c0_23] : memref<2x8x36xf32, #tpu.memory_space<vmem>>, vector<1x8x36xf32>
    %54 = vector.shape_cast %53 : vector<1x8x36xf32> to vector<8x36xf32>
    %55 = vector.shape_cast %52 : vector<8x36xf32> to vector<1x8x36xf32>
    tpu.vector_store %arg3[%c1_21, %c0_22, %c0_23], %55 {strides = array<i32>} : memref<2x8x36xf32, #tpu.memory_space<vmem>>, vector<1x8x36xf32>,
    return
  }
  func.func @transform_0(%arg0: i32) -> (i32, i32, i32) {
    %c0_i32 = arith.constant 0 : i32
    %c0_i32_0 = arith.constant 0 : i32
    %c0_i32_1 = arith.constant 0 : i32
    return %arg0, %c0_i32, %c0_i32_0 : i32, i32, i32
  }
  func.func @transform_1(%arg0: i32) -> (i32, i32) {
    %c0_i32 = arith.constant 0 : i32
    %c0_i32_0 = arith.constant 0 : i32
    %c0_i32_1 = arith.constant 0 : i32
    return %c0_i32, %c0_i32_0 : i32, i32
  }
  func.func @transform_2(%arg0: i32) -> (i32, i32, i32) {
    %c0_i32 = arith.constant 0 : i32
    %c0_i32_0 = arith.constant 0 : i32
    %c0_i32_1 = arith.constant 0 : i32
    return %arg0, %c0_i32, %c0_i32_0 : i32, i32, i32
  }
}

</mosaic_0001>

<bundles_post_ra>
// kernel: primary_capsules_forward.1
= control target key start
LH: loop header
LB: loop body
LE: loop exit
PB: predicated region body
PF: predicated region fallthrough
CT: control target
= control target key end

     0   :  { %vm35_vm0 = vcmask 1044480   ;;  %v412_v0 = vmov 0.0   ;;  %vm413_vm1 = vmmov 0   ;;  %vm31_vm2 = vcmask 826368   ;;  %s416_s7 = smov 93   ;;  %s417_s8 = smov 94   ;;  %s575_s0 = inlined_call_operand.vmem [shape: f32[2,101,36], index: 0, kind: input, shape index: {}]   ;;  %s576_s1 = inlined_call_operand.vmem [shape: f32[8,101], index: 1, kind: input, shape index: {}]   ;;  %s577_s2 = inlined_call_operand.vmem [shape: f32[2,8,36], index: 2, kind: output, shape index: {}]  }
   0x1   :  { %339 = vmatprep.subr.mxu0 %v412_v0  ;;  %v30_v1 = vld [vmem:[%s575_s0 + $0x60] sm:$0x1f]  ;;  %368 = vmatprep.subr.mxu1 %v412_v0  ;;  %v29_v2 = vld [vmem:[%s575_s0 + $0x58] sm:$0xff]  ;;  %v307_v3 = vld [vmem:[%s575_s0 + $0xc8] sm:$0x1f]  ;;  %vm110_vm3 = vcmask 1047840   ;;  %v12_v42 = vlaneseq }
   0x2   :  { %340 = vmatpush3.msk.msra.mxu0 %vm35_vm0, %v30_v1  ;;  %369 = vmatpush3.msk.msra.mxu1 %vm35_vm0, %v307_v3  ;;  %v306_v4 = vld [vmem:[%s575_s0 + $0xc0] sm:$0xff]  ;;  %v28_v5 = vld [vmem:[%s575_s0 + $0x50] sm:$0xff]  ;;  %v305_v6 = vld [vmem:[%s575_s0 + $0xb8] sm:$0xff]  ;;  %s418_s9 = smov 126   ;;  %vm154_vm10 = vcmask 293888  }
   0x3   :  { %341 = vmatprep.subr.mxu0 %v412_v0  ;;  %370 = vmatprep.subr.mxu1 %v412_v0  ;;  %v27_v7 = vld [vmem:[%s575_s0 + $0x48] sm:$0xff]  ;;  %v304_v8 = vld [vmem:[%s575_s0 + $0xb0] sm:$0xff]  ;;  %v26_v9 = vld [vmem:[%s575_s0 + $0x40] sm:$0xff]  ;;  %v13_v43 = vand.u32 127, %v12_v42 }
   0x4   :  { %342 = vmatpush3.msra.mxu0 %v29_v2  ;;  %371 = vmatpush3.msra.mxu1 %v306_v4  ;;  %v303_v10 = vld [vmem:[%s575_s0 + $0xa8] sm:$0xff]  ;;  %v25_v11 = vld [vmem:[%s575_s0 + $0x38] sm:$0xff]  ;;  %v302_v12 = vld [vmem:[%s575_s0 + $0xa0] sm:$0xff] }
   0x5   :  { %343 = vmatprep.subr.mxu0 %v412_v0  ;;  %372 = vmatprep.subr.mxu1 %v412_v0  ;;  %v24_v13 = vld [vmem:[%s575_s0 + $0x30] sm:$0xff]  ;;  %v301_v14 = vld [vmem:[%s575_s0 + $0x98] sm:$0xff]  ;;  %v23_v15 = vld [vmem:[%s575_s0 + $0x28] sm:$0xff]  ;;  %v14_v44 = vand.u32 1, %v13_v43  ;;  %v16_v61 = vand.u32 2, %v13_v43 }
   0x6   :  { %344 = vmatpush3.msra.mxu0 %v28_v5  ;;  %373 = vmatpush3.msra.mxu1 %v305_v6  ;;  %v300_v16 = vld [vmem:[%s575_s0 + $0x90] sm:$0xff]  ;;  %v22_v17 = vld [vmem:[%s575_s0 + $0x20] sm:$0xff]  ;;  %v299_v18 = vld [vmem:[%s575_s0 + $0x88] sm:$0xff] }
   0x7   :  { %345 = vmatprep.subr.mxu0 %v412_v0  ;;  %374 = vmatprep.subr.mxu1 %v412_v0  ;;  %v21_v19 = vld [vmem:[%s575_s0 + $0x18] sm:$0xff]  ;;  %v298_v20 = vld [vmem:[%s575_s0 + $0x80] sm:$0xff]  ;;  %v20_v21 = vld [vmem:[%s575_s0 + $0x10] sm:$0xff]  ;;  %vm15_vm4 = vcmp.eq.s32.totalorder %v14_v44, 0  ;;  %vm17_vm5 = vcmp.eq.s32.totalorder %v16_v61, 0 }
   0x8   :  { %346 = vmatpush3.msra.mxu0 %v27_v7  ;;  %375 = vmatpush3.msra.mxu1 %v304_v8  ;;  %v297_v22 = vld [vmem:[%s575_s0 + $0x78] sm:$0xff]  ;;  %v19_v23 = vld [vmem:[%s575_s0 + $0x8] sm:$0xff]  ;;  %v296_v24 = vld [vmem:[%s575_s0 + $0x70] sm:$0xff] }
   0x9   :  { %347 = vmatprep.subr.mxu0 %v412_v0  ;;  %376 = vmatprep.subr.mxu1 %v412_v0  ;;  %v18_v25 = vld [vmem:[%s575_s0] sm:$0xff]  ;;  %v295_v27 = vld [vmem:[%s575_s0 + $0x68] sm:$0xff]  ;;  %s414_s0 = smov 36  }
   0xa   :  { %348 = vmatpush3.msra.mxu0 %v26_v9  ;;  %377 = vmatpush3.msra.mxu1 %v303_v10  ;;  %v11_v26 = vld [vmem:[%s576_s1] sm:$0xff]  ;;  %s415_s1 = smov 127  }
   0xb   :  { %349 = vmatprep.subr.mxu0 %v412_v0  ;;  %378 = vmatprep.subr.mxu1 %v412_v0 }
   0xc   :  { %350 = vmatpush3.msra.mxu0 %v25_v11  ;;  %379 = vmatpush3.msra.mxu1 %v302_v12 }
   0xd   :  { %351 = vmatprep.subr.mxu0 %v412_v0  ;;  %380 = vmatprep.subr.mxu1 %v412_v0 }
   0xe   :  { %352 = vmatpush3.msra.mxu0 %v24_v13  ;;  %381 = vmatpush3.msra.mxu1 %v301_v14 }
   0xf   :  { %353 = vmatprep.subr.mxu0 %v412_v0  ;;  %382 = vmatprep.subr.mxu1 %v412_v0 }
  0x10   :  { %354 = vmatpush3.msra.mxu0 %v23_v15  ;;  %383 = vmatpush3.msra.mxu1 %v300_v16 }
  0x11   :  { %355 = vmatprep.subr.mxu0 %v412_v0  ;;  %384 = vmatprep.subr.mxu1 %v412_v0 }
  0x12   :  { %356 = vmatpush3.msra.mxu0 %v22_v17  ;;  %385 = vmatpush3.msra.mxu1 %v299_v18 }
  0x13   :  { %357 = vmatprep.subr.mxu0 %v412_v0  ;;  %386 = vmatprep.subr.mxu1 %v412_v0 }
  0x14   :  { %358 = vmatpush3.msra.mxu0 %v21_v19  ;;  %387 = vmatpush3.msra.mxu1 %v298_v20 }
  0x15   :  { %359 = vmatprep.subr.mxu0 %v412_v0  ;;  %388 = vmatprep.subr.mxu1 %v412_v0 }
  0x16   :  { %360 = vmatpush3.msra.mxu0 %v20_v21  ;;  %389 = vmatpush3.msra.mxu1 %v297_v22 }
  0x17   :  { %361 = vmatprep.subr.mxu0 %v412_v0  ;;  %390 = vmatprep.subr.mxu1 %v412_v0 }
  0x18   :  { %362 = vmatpush3.msra.mxu0 %v19_v23  ;;  %365 = vmatprep.mubr.msk.f32.mxu0 %vm413_vm1, %v412_v0 }
  0x19   :  { %363 = vmatprep.subr.mxu0 %v412_v0  ;;  %391 = vmatpush3.msra.mxu1 %v296_v24 }
  0x1a   :  { %364 = vmatpush3.msra.mxu0 %v18_v25  ;;  %392 = vmatprep.subr.mxu1 %v412_v0 }
  0x1b   :  { %366 = vmatmul.mubr.msk.f32.vlgmr.msra.gmra.mxu0 %vm31_vm2, %v11_v26  ;;  %393 = vmatpush3.msra.mxu1 %v295_v27 }
  0x1c   :  { %394 = vmatprep.mubr.msk.f32.mxu1 %vm413_vm1, %v412_v0 }
  0x1d   :  { %395 = vmatmul.mubr.msk.f32.vlgmr.msra.gmra.mxu1 %vm31_vm2, %v11_v26 }
  0xdb   :  { %v543_v28 = vpop.f32.mrf.mxu0 }
  0xdc   :  { %v109_v29 = vmul.f32 %v543_v28, %v543_v28 }
  0xdd   :  { %v367_v30 = vpop.f32.mrf.mxu0  ;;  %v547_v31 = vpop.f32.mrf.mxu1 }
  0xde   :  { %v243_v32 = vmul.f32 %v547_v31, %v547_v31  ;;  %111 = vrot.lane.b32.xlu0 %v109_v29, %s414_s0 }
  0xdf   :  { %v396_v33 = vpop.f32.mrf.mxu1 }
  0xe2   :  { %244 = vrot.lane.b32.xlu0 %v243_v32, %s414_s0 }
 0x150   :  { %v112_v34 = vpop.permute.xlu0 %111 }
 0x151   :  { %v113_v35 = vsel %vm110_vm3, %v112_v34, %v109_v29 }
 0x152   :  { %114 = vrot.lane.b32.xlu1 %v113_v35, %s414_s0 }
 0x154   :  { %v245_v36 = vpop.permute.xlu0 %244 }
 0x155   :  { %v246_v37 = vsel %vm110_vm3, %v245_v36, %v243_v32 }
 0x156   :  { %247 = vrot.lane.b32.xlu1 %v246_v37, %s414_s0 }
 0x1c4   :  { %v115_v38 = vpop.permute.xlu1 %114 }
 0x1c5   :  { %v116_v39 = vsel %vm110_vm3, %v115_v38, %v109_v29 }
 0x1c6   :  { %118 = vrot.lane.b32.xlu0 %v116_v39, %s415_s1  ;;  %121 = vrot.lane.b32.xlu1 %v116_v39, %s416_s7 }
 0x1c8   :  { %v248_v40 = vpop.permute.xlu1 %247 }
 0x1c9   :  { %v249_v41 = vsel %vm110_vm3, %v248_v40, %v243_v32 }
 0x1ca   :  { %254 = vrot.lane.b32.xlu1 %v249_v41, %s416_s7  ;;  %251 = vrot.lane.b32.xlu0 %v249_v41, %s415_s1 }
 0x238   :  { %v122_v45 = vpop.permute.xlu1 %121  ;;  %v119_v46 = vpop.permute.xlu0 %118 }
 0x239   :  { %v124_v47 = vsel %vm15_vm4, %v119_v46, %v122_v45 }
 0x23a   :  { %v125_v48 = vadd.f32 %v124_v47, %v109_v29 }
 0x23c   :  { %v255_v49 = vpop.permute.xlu1 %254  ;;  %126 = vrot.lane.b32.xlu0 %v125_v48, %s414_s0  ;;  %v252_v50 = vpop.permute.xlu0 %251 }
 0x23d   :  { %v257_v51 = vsel %vm15_vm4, %v252_v50, %v255_v49 }
 0x23e   :  { %v258_v52 = vadd.f32 %v257_v51, %v243_v32 }
 0x240   :  { %259 = vrot.lane.b32.xlu1 %v258_v52, %s414_s0 }
 0x2ae   :  { %v127_v53 = vpop.permute.xlu0 %126 }
 0x2af   :  { %v128_v54 = vsel %vm110_vm3, %v127_v53, %v125_v48 }
 0x2b0   :  { %129 = vrot.lane.b32.xlu0 %v128_v54, %s414_s0 }
 0x2b2   :  { %v260_v55 = vpop.permute.xlu1 %259 }
 0x2b3   :  { %v261_v56 = vsel %vm110_vm3, %v260_v55, %v258_v52 }
 0x2b4   :  { %262 = vrot.lane.b32.xlu1 %v261_v56, %s414_s0 }
 0x322   :  { %v130_v57 = vpop.permute.xlu0 %129 }
 0x323   :  { %v131_v58 = vsel %vm110_vm3, %v130_v57, %v125_v48 }
 0x324   :  { %136 = vrot.lane.b32.xlu1 %v131_v58, %s417_s8  ;;  %133 = vrot.lane.b32.xlu0 %v131_v58, %s418_s9 }
 0x326   :  { %v263_v59 = vpop.permute.xlu1 %262 }
 0x327   :  { %v264_v60 = vsel %vm110_vm3, %v263_v59, %v258_v52 }
 0x328   :  { %269 = vrot.lane.b32.xlu1 %v264_v60, %s417_s8  ;;  %266 = vrot.lane.b32.xlu0 %v264_v60, %s418_s9 }
 0x396   :  { %v137_v62 = vpop.permute.xlu1 %136  ;;  %v134_v63 = vpop.permute.xlu0 %133 }
 0x397   :  { %v139_v0 = vsel %vm17_vm5, %v134_v63, %v137_v62 }
 0x398   :  { %v140_v1 = vadd.f32 %v139_v0, %v125_v48 }
 0x39a   :  { %404 = vrsqrt.f32 %v140_v1  ;;  %v270_v2 = vpop.permute.xlu1 %269  ;;  %v267_v3 = vpop.permute.xlu0 %266  ;;  %vm144_vm6 = vcmp.eq.f32.partialorder %v140_v1, inf  ;;  %v147_v8 = vand.u32 2147483648, %v140_v1  ;;  %vm146_vm7 = vcmp.eq.f32.partialorder %v140_v1, 0.0 }
 0x39b   :  { %v272_v4 = vsel %vm17_vm5, %v267_v3, %v270_v2  ;;  %v141_v12 = vadd.f32 1.0, %v140_v1 }
 0x39c   :  { %v273_v5 = vadd.f32 %v272_v4, %v258_v52 }
 0x39e   :  { %406 = vrsqrt.f32 %v273_v5  ;;  %vm277_vm8 = vcmp.eq.f32.partialorder %v273_v5, inf  ;;  %v280_v15 = vand.u32 2147483648, %v273_v5  ;;  %vm279_vm9 = vcmp.eq.f32.partialorder %v273_v5, 0.0 }
 0x39f   :  { %v274_v19 = vadd.f32 1.0, %v273_v5 }
 0x3a7   :  { %v405_v6 = vpop.eup %404 }
 0x3a8   :  { %v143_v7 = vmul.f32 %v405_v6, %v140_v1 }
 0x3aa   :  { %v145_v9 = vsel %vm144_vm6, %v140_v1, %v143_v7 }
 0x3ab   :  { %v407_v10 = vpop.eup %406  ;;  %v148_v11 = vsel %vm146_vm7, %v147_v8, %v145_v9 }
 0x3ac   :  { %v149_v13 = vadd.f32 1e-08, %v148_v11  ;;  %v276_v14 = vmul.f32 %v407_v10, %v273_v5 }
 0x3ae   :  { %v150_v16 = vmul.f32 %v149_v13, %v141_v12  ;;  %v278_v17 = vsel %vm277_vm8, %v273_v5, %v276_v14 }
 0x3af   :  { %v281_v18 = vsel %vm279_vm9, %v280_v15, %v278_v17 }
 0x3b0   :  { %408 = vrcp.f32 %v150_v16  ;;  %v282_v20 = vadd.f32 1e-08, %v281_v18 }
 0x3b2   :  { %v283_v21 = vmul.f32 %v282_v20, %v274_v19 }
 0x3b4   :  { %410 = vrcp.f32 %v283_v21 }
 0x3bd   :  { %v409_v22 = vpop.eup %408 }
 0x3be   :  { %v152_v23 = vmul.f32 %v409_v22, %v140_v1 }
 0x3c0   :  { %v153_v24 = vmul.f32 %v152_v23, %v543_v28 }
 0x3c1   :  { %v411_v25 = vpop.eup %410 }
 0x3c2   :  { %155 = vst.msk [vmem:[%s577_s2] sm:$0xff] %vm154_vm10, %v153_v24  ;;  %v285_v26 = vmul.f32 %v411_v25, %v273_v5 }
 0x3c4   :  { %v286_v27 = vmul.f32 %v285_v26, %v547_v31 }
 0x3c6   :  { %310 = vst.msk [vmem:[%s577_s2 + $0x8] sm:$0xff] %vm154_vm10, %v286_v27 }

</bundles_post_ra>
